<compile_context>
chip_gen: v5e
topology: v5e:2x2
jax: 0.10.0
libtpu: 0.0.40
codegen_flags: <defaults>
</compile_context>

<pallas_src>
import jax
import jax.numpy as jnp
from jax.experimental import pallas as pl
from jax.experimental.pallas import tpu as pltpu


def _round_up(x: int, m: int) -> int:
    return (x + m - 1) // m * m


def _masked_linear_kernel_acc(x_ref, wt_ref, mt_ref, b_ref, o_ref, acc_ref):
    """Multi K-step path: one (tm, tn) output tile, accumulated over grid axis 2."""
    k = pl.program_id(2)

    @pl.when(k == 0)
    def _():
        acc_ref[...] = jnp.zeros_like(acc_ref)

    # Mask multiply on the VPU (int8/float mask upcast to weight dtype), then
    # MXU matmul with f32 accumulation. RHS tile is (tk, tn): contraction on
    # its leading dim, OUT on the lane axis -> lane-dense output tile.
    wm = wt_ref[...] * mt_ref[...].astype(wt_ref.dtype)
    acc_ref[...] += jax.lax.dot_general(
        x_ref[...],
        wm,
        dimension_numbers=(((1,), (0,)), ((), ())),
        preferred_element_type=jnp.float32,
    )

    @pl.when(k == pl.num_programs(2) - 1)
    def _():
        # Bias added exactly once per output tile, in the epilogue.
        o_ref[...] = (acc_ref[...] + b_ref[...]).astype(o_ref.dtype)


def _masked_linear_kernel_fused(x_ref, wt_ref, mt_ref, b_ref, o_ref):
    """Single K-step path: no scratch accumulator, bias fused into the store."""
    wm = wt_ref[...] * mt_ref[...].astype(wt_ref.dtype)
    acc = jax.lax.dot_general(
        x_ref[...],
        wm,
        dimension_numbers=(((1,), (0,)), ((), ())),
        preferred_element_type=jnp.float32,
    )
    o_ref[...] = (acc + b_ref[...]).astype(o_ref.dtype)


def masked_linear(x, weight, mask, bias, *, binary_mask: bool = True):
    """y = x @ (weight * mask)^T + bias  (MaskedLinear forward)."""
    B, IN = x.shape
    OUT, IN_w = weight.shape
    assert IN == IN_w and mask.shape == weight.shape and bias.shape == (OUT,)

    # ---- tile sizes: lane-dense N, 8-aligned M, K a multiple of 128 ---------
    tm = min(_round_up(B, 8), 128)
    tn = 256 if OUT >= 256 else 128
    IN_p = _round_up(IN, 128)
    tk = next(c for c in (512, 256, 128) if IN_p % c == 0)

    B_p = _round_up(B, tm)
    OUT_p = _round_up(OUT, tn)
    n_k = IN_p // tk
    single_k = n_k == 1

    # ---- one-time layout plumbing OUTSIDE the hot loop ----------------------
    # Transpose W, M to (IN, OUT). Binary MADE masks travel as int8; arbitrary
    # float masks (binary_mask=False) travel in x.dtype -- the kernel multiply
    # is identical in both cases.
    mask_dtype = jnp.int8 if binary_mask else x.dtype
    wt = jnp.pad(weight.T.astype(x.dtype), ((0, IN_p - IN), (0, OUT_p - OUT)))
    mt = jnp.pad(mask.T.astype(mask_dtype), ((0, IN_p - IN), (0, OUT_p - OUT)))
    xp = jnp.pad(x, ((0, B_p - B), (0, IN_p - IN)))
    bp = jnp.pad(bias.astype(jnp.float32), (0, OUT_p - OUT)).reshape(1, OUT_p)

    grid = (B_p // tm, OUT_p // tn, n_k)

    # VMEM budget: double-buffered input/output tiles (+ f32 accumulator when
    # the accumulating path is used).
    esz = jnp.dtype(x.dtype).itemsize
    msz = jnp.dtype(mask_dtype).itemsize
    tile_bytes = (
        2 * (tm * tk * esz + tk * tn * esz + tk * tn * msz + tn * 4)  # inputs x2
        + 2 * tm * tn * esz                                           # output x2
        + (0 if single_k else tm * tn * 4)                            # accumulator
    )
    vmem_limit = int(min(max(4 * tile_bytes, 8 << 20), 64 << 20))

    kernel = _masked_linear_kernel_fused if single_k else _masked_linear_kernel_acc
    scratch = [] if single_k else [pltpu.VMEM((tm, tn), jnp.float32)]

    cost = pl.CostEstimate(
        flops=2 * B_p * IN_p * OUT_p + B_p * OUT_p,
        transcendentals=0,
        bytes_accessed=(
            B_p * IN_p * esz
            + IN_p * OUT_p * (esz + msz)
            + OUT_p * 4
            + B_p * OUT_p * esz
        ),
    )

    out_padded = pl.pallas_call(
        kernel,
        out_shape=jax.ShapeDtypeStruct((B_p, OUT_p), x.dtype),
        grid_spec=pltpu.PrefetchScalarGridSpec(
            num_scalar_prefetch=0,
            grid=grid,
            in_specs=[
                pl.BlockSpec((tm, tk), lambda i, j, k: (i, k)),   # x tile
                pl.BlockSpec((tk, tn), lambda i, j, k: (k, j)),   # W^T tile
                pl.BlockSpec((tk, tn), lambda i, j, k: (k, j)),   # M^T tile
                pl.BlockSpec((1, tn), lambda i, j, k: (0, j)),    # bias tile
            ],
            out_specs=pl.BlockSpec((tm, tn), lambda i, j, k: (i, j)),
            scratch_shapes=scratch,
        ),
        compiler_params=pltpu.CompilerParams(
            dimension_semantics=("parallel", "parallel", "arbitrary"),
            vmem_limit_bytes=vmem_limit,
        ),
        cost_estimate=cost,
    )(xp, wt, mt, bp)

    return out_padded[:B, :OUT]


if __name__ == "__main__":
    key = jax.random.PRNGKey(0)

    # --- small demo shapes consistent with nn.Linear(in_channel, out_channel)
    batch, in_channel, out_channel = 8, 32, 64
    k_x, k_w, k_b, k_m = jax.random.split(key, 4)
    x = jax.random.normal(k_x, (batch, in_channel), dtype=jnp.float32)
    weight = jax.random.normal(k_w, (out_channel, in_channel), dtype=jnp.float32) * 0.1
    bias = jax.random.normal(k_b, (out_channel,), dtype=jnp.float32) * 0.1
    # Autoregressive-style binary mask, as set_mask() would install.
    mask = (jax.random.uniform(k_m, (out_channel, in_channel)) > 0.5).astype(jnp.float32)

    y = masked_linear(x, weight, mask, bias)
    y = jax.block_until_ready(y)
    y_ref = x @ (weight * mask).T + bias
    assert y.shape == (batch, out_channel)
    assert jnp.allclose(y, y_ref, atol=1e-5, rtol=1e-5), "mismatch vs reference (small)"

    # --- larger shapes exercising the multi-tile (N, K) accumulating grid path
    b2, in2, out2 = 16, 384, 320
    k_x2, k_w2, k_b2, k_m2 = jax.random.split(jax.random.PRNGKey(1), 4)
    x2 = jax.random.normal(k_x2, (b2, in2), dtype=jnp.float32)
    w2 = jax.random.normal(k_w2, (out2, in2), dtype=jnp.float32) * 0.05
    bias2 = jax.random.normal(k_b2, (out2,), dtype=jnp.float32) * 0.1
    m2 = (jax.random.uniform(k_m2, (out2, in2)) > 0.5).astype(jnp.float32)

    y2 = masked_linear(x2, w2, m2, bias2)
    y2 = jax.block_until_ready(y2)
    y2_ref = x2 @ (w2 * m2).T + bias2
    assert y2.shape == (b2, out2)
    assert jnp.allclose(y2, y2_ref, atol=1e-4, rtol=1e-4), "mismatch vs reference (tiled)"

    # --- non-binary mask path (module allows arbitrary float masks)
    m3 = jax.random.uniform(jax.random.PRNGKey(2), (out_channel, in_channel))
    y3 = masked_linear(x, weight, m3, bias, binary_mask=False)
    y3 = jax.block_until_ready(y3)
    y3_ref = x @ (weight * m3).T + bias
    assert jnp.allclose(y3, y3_ref, atol=1e-5, rtol=1e-5), "mismatch vs reference (float mask)"

    print("KERNEL_OK")
</pallas_src>

<mosaic_0001>
module attributes {stable_mosaic.version = 11 : i64} {
  func.func @_masked_linear_kernel_fused(%arg0: i32, %arg1: i32, %arg2: i32, %arg3: memref<8x128xf32, #tpu.memory_space<vmem>>, %arg4: memref<128x128xf32, #tpu.memory_space<vmem>>, %arg5: memref<128x128xi8, #tpu.memory_space<vmem>>, %arg6: memref<1x128xf32, #tpu.memory_space<vmem>>, %arg7: memref<8x128xf32, #tpu.memory_space<vmem>>) attributes {dimension_semantics = [#tpu.dimension_semantics<parallel>, #tpu.dimension_semantics<parallel>, #tpu.dimension_semantics<arbitrary>], iteration_bounds = array<i64: 1, 1, 1>, scalar_prefetch = 0 : i64, scratch_operands = 0 : i64, tpu.core_type = #tpu.core_type<tc>, window_params = [{transform_indices = @transform_0, window_bounds = array<i64: 8, 128>}, {transform_indices = @transform_1, window_bounds = array<i64: 128, 128>}, {transform_indices = @transform_2, window_bounds = array<i64: 128, 128>}, {transform_indices = @transform_3, window_bounds = array<i64: 1, 128>}, {transform_indices = @transform_4, window_bounds = array<i64: 8, 128>}]} {
    %c0 = arith.constant 0 : index
    %c0_0 = arith.constant 0 : index
    %0 = vector.load %arg4[%c0, %c0_0] : memref<128x128xf32, #tpu.memory_space<vmem>>, vector<128x128xf32>
    %c0_1 = arith.constant 0 : index
    %c0_2 = arith.constant 0 : index
    %1 = vector.load %arg5[%c0_1, %c0_2] : memref<128x128xi8, #tpu.memory_space<vmem>>, vector<128x128xi8>
    %2 = arith.sitofp %1 : vector<128x128xi8> to vector<128x128xf32>
    %3 = arith.mulf %0, %2 : vector<128x128xf32>
    %c0_3 = arith.constant 0 : index
    %c0_4 = arith.constant 0 : index
    %4 = vector.load %arg3[%c0_3, %c0_4] : memref<8x128xf32, #tpu.memory_space<vmem>>, vector<8x128xf32>
    %cst = arith.constant dense<0.000000e+00> : vector<8x128xf32>
    %5 = tpu.matmul %4, %3, %cst {dimension_numbers = #tpu.dot_dimension_numbers<[1], [0], [0], [1], [0, 0, 1, 1], [], []>} : vector<8x128xf32>, vector<128x128xf32>, vector<8x128xf32> -> vector<8x128xf32>
    %c0_5 = arith.constant 0 : index
    %c0_6 = arith.constant 0 : index
    %6 = vector.load %arg6[%c0_5, %c0_6] : memref<1x128xf32, #tpu.memory_space<vmem>>, vector<1x128xf32>
    %7 = vector.broadcast %6 : vector<1x128xf32> to vector<8x128xf32>
    %8 = arith.addf %5, %7 : vector<8x128xf32>
    %c0_7 = arith.constant 0 : index
    %c0_8 = arith.constant 0 : index
    %9 = vector.load %arg7[%c0_7, %c0_8] : memref<8x128xf32, #tpu.memory_space<vmem>>, vector<8x128xf32>
    tpu.vector_store %arg7[%c0_7, %c0_8], %8 {strides = array<i32>} : memref<8x128xf32, #tpu.memory_space<vmem>>, vector<8x128xf32>,
    return
  }
  func.func @transform_0(%arg0: i32, %arg1: i32, %arg2: i32) -> (i32, i32) {
    %c0_i32 = arith.constant 0 : i32
    return %arg0, %arg2 : i32, i32
  }
  func.func @transform_1(%arg0: i32, %arg1: i32, %arg2: i32) -> (i32, i32) {
    %c0_i32 = arith.constant 0 : i32
    return %arg2, %arg1 : i32, i32
  }
  func.func @transform_2(%arg0: i32, %arg1: i32, %arg2: i32) -> (i32, i32) {
    %c0_i32 = arith.constant 0 : i32
    return %arg2, %arg1 : i32, i32
  }
  func.func @transform_3(%arg0: i32, %arg1: i32, %arg2: i32) -> (i32, i32) {
    %c0_i32 = arith.constant 0 : i32
    %c0_i32_0 = arith.constant 0 : i32
    return %c0_i32, %arg1 : i32, i32
  }
  func.func @transform_4(%arg0: i32, %arg1: i32, %arg2: i32) -> (i32, i32) {
    %c0_i32 = arith.constant 0 : i32
    return %arg0, %arg1 : i32, i32
  }
}

</mosaic_0001>

<bundles_post_ra>
// kernel: tpu_custom_call.1
= control target key start
LH: loop header
LB: loop body
LE: loop exit
PB: predicated region body
PF: predicated region fallthrough
CT: control target
= control target key end

     0   :  { %9 = vsyncpa [#allocation3], 0  ;;  %s330_s0 = inlined_call_operand.hbm [shape: f32[8,128], index: 0, kind: input, shape index: {}]   ;;  %s331_s1 = inlined_call_operand.hbm [shape: f32[128,128], index: 1, kind: input, shape index: {}]   ;;  %s332_s2 = inlined_call_operand.hbm [shape: s8[128,128], index: 2, kind: input, shape index: {}]   ;;  %s333_s3 = inlined_call_operand.vmem [shape: f32[1,128], index: 3, kind: input, shape index: {}]   ;;  %s334_s4 = inlined_call_operand.hbm [shape: f32[8,128], index: 4, kind: output, shape index: {}]  }
   0x1   :  { %10 = vsyncpa [#allocation6], 0  ;;  %s27_s17 = sshll.u32 %s331_s1, 4  ;;  %s28_s17 = int_to_ptr.hbm [resolvable:$true] %s27_s17 }
   0x2   :  { %11 = vsyncpa [#allocation4], 0  ;;  %s284_s18 = smov [#allocation5]   ;;  %s17_s22 = sshll.u32 %s330_s0, 4  ;;  %s18_s22 = int_to_ptr.hbm [resolvable:$true] %s17_s22 }
   0x3   :  { %s29_s19 = sshll.u32 %s284_s18, 4  ;;  %s285_s23 = smov 128   ;;  %s30_s19 = int_to_ptr.vmem [resolvable:$true] %s29_s19 }
   0x4   :  { %s286_s24 = smov 8   ;;  %s287_s25 = smov [#allocation2]  }
   0x5   :  { %35 = dma.hbm_to_vmem [thread:$0]  %s28_s17, 2048, %s30_s19, [#allocation6], %s285_s23, %s285_s23, %s286_s24  }
   0x6   :  { %s19_s26 = sshll.u32 %s287_s25, 4  ;;  %s40_s29 = sshll.u32 %s332_s2, 4  ;;  %s20_s26 = int_to_ptr.vmem [resolvable:$true] %s19_s26  ;;  %s41_s29 = int_to_ptr.hbm [resolvable:$true] %s40_s29 }
   0x7   :  { %22 = dma.hbm_to_vmem [thread:$0]  %s18_s22, 128, %s20_s26, [#allocation3]  }
   0x8   :  { %s288_s1 = smov [#allocation7]  }
   0x9   :  { %s42_s30 = sshll.u32 %s288_s1, 4  ;;  %s43_s30 = int_to_ptr.vmem [resolvable:$true] %s42_s30 }
   0xa   :  { %48 = dma.hbm_to_vmem [thread:$0]  %s41_s29, 512, %s43_s30, [#allocation6], %s285_s23, %s285_s23, %s286_s24  }
   0xb   :  { %278 = dma.done.wait [#allocation3], 128  }
   0xc   :  { %279 = vsyncadd [#allocation3], 4294967168 }
   0xd   :  { %280 = dma.done.wait [#allocation6], 2560  }
   0xe   :  { %281 = vsyncadd [#allocation6], 4294964736  ;;  %v82_v0 = vld [vmem:[#allocation7 + $0x18] sm:$0xff]  ;;  %v77_v6 = vld [vmem:[#allocation5 + $0x70] sm:$0xff]  ;;  %s289_s5 = smov [#allocation8]   ;;  %s164_s9 = sshll.u32 %s334_s4, 4  ;;  %s165_s9 = int_to_ptr.hbm [resolvable:$true] %s164_s9 }
   0xf   :  { %v98_v1 = vunpack.c.3.s8 %v82_v0  ;;  %v97_v2 = vunpack.c.2.s8 %v82_v0  ;;  %v96_v3 = vunpack.c.1.s8 %v82_v0  ;;  %v95_v4 = vunpack.c.0.s8 %v82_v0  ;;  %v78_v5 = vld [vmem:[#allocation5 + $0x78] sm:$0xff]  ;;  %v81_v7 = vld [vmem:[#allocation7 + $0x10] sm:$0xff]  ;;  %v76_v11 = vld [vmem:[#allocation5 + $0x68] sm:$0xff]  ;;  %s162_s6 = sshll.u32 %s289_s5, 4  ;;  %s163_s6 = int_to_ptr.vmem [resolvable:$true] %s162_s6 }
  0x10   :  { %v94_v12 = vunpack.c.3.s8 %v81_v7  ;;  %v93_v16 = vunpack.c.2.s8 %v81_v7  ;;  %v75_v17 = vld [vmem:[#allocation5 + $0x60] sm:$0xff]  ;;  %v92_v20 = vunpack.c.1.s8 %v81_v7  ;;  %v74_v21 = vld [vmem:[#allocation5 + $0x58] sm:$0xff]  ;;  %v80_v22 = vld [vmem:[#allocation7 + $0x8] sm:$0xff]  ;;  %v91_v25 = vunpack.c.0.s8 %v81_v7 }
  0x11   :  { %v114_v8 = vcvt.s32.f32 %v98_v1  ;;  %v113_v9 = vcvt.s32.f32 %v97_v2  ;;  %v112_v10 = vcvt.s32.f32 %v96_v3  ;;  %v111_v15 = vcvt.s32.f32 %v95_v4  ;;  %v73_v26 = vld [vmem:[#allocation5 + $0x50] sm:$0xff]  ;;  %v72_v30 = vld [vmem:[#allocation5 + $0x48] sm:$0xff]  ;;  %v71_v34 = vld [vmem:[#allocation5 + $0x40] sm:$0xff] }
  0x12   :  { %v110_v19 = vcvt.s32.f32 %v94_v12  ;;  %v109_v24 = vcvt.s32.f32 %v93_v16  ;;  %v108_v28 = vcvt.s32.f32 %v92_v20  ;;  %v90_v29 = vunpack.c.3.s8 %v80_v22  ;;  %v70_v38 = vld [vmem:[#allocation5 + $0x38] sm:$0xff]  ;;  %v79_v39 = vld [vmem:[#allocation7] sm:$0xff]  ;;  %v69_v43 = vld [vmem:[#allocation5 + $0x30] sm:$0xff] }
  0x13   :  { %v130_v13 = vmul.f32 %v114_v8, %v78_v5  ;;  %v129_v14 = vmul.f32 %v113_v9, %v77_v6  ;;  %v128_v18 = vmul.f32 %v112_v10, %v76_v11  ;;  %v127_v23 = vmul.f32 %v111_v15, %v75_v17  ;;  %v68_v47 = vld [vmem:[#allocation5 + $0x28] sm:$0xff]  ;;  %v67_v51 = vld [vmem:[#allocation5 + $0x20] sm:$0xff]  ;;  %v66_v55 = vld [vmem:[#allocation5 + $0x18] sm:$0xff] }
  0x14   :  { %v126_v27 = vmul.f32 %v110_v19, %v74_v21  ;;  %v125_v31 = vmul.f32 %v109_v24, %v73_v26  ;;  %v107_v32 = vcvt.s32.f32 %v91_v25  ;;  %v89_v33 = vunpack.c.2.s8 %v80_v22  ;;  %v65_v59 = vld [vmem:[#allocation5 + $0x10] sm:$0xff]  ;;  %v64_v62 = vld [vmem:[#allocation5 + $0x8] sm:$0xff]  ;;  %v63_v1 = vld [vmem:[#allocation5] sm:$0xff] }
  0x15   :  { %136 = vmatpush.msra.mxu0 %v130_v13  ;;  %v124_v35 = vmul.f32 %v108_v28, %v72_v30  ;;  %v106_v36 = vcvt.s32.f32 %v90_v29  ;;  %v88_v37 = vunpack.c.1.s8 %v80_v22  ;;  %v87_v42 = vunpack.c.0.s8 %v80_v22  ;;  %v131_v4 = vld [vmem:[#allocation2] sm:$0xff] }
  0x16   :  { %v123_v40 = vmul.f32 %v107_v32, %v71_v34  ;;  %v105_v41 = vcvt.s32.f32 %v89_v33  ;;  %v86_v46 = vunpack.c.3.s8 %v79_v39  ;;  %v85_v50 = vunpack.c.2.s8 %v79_v39  ;;  %v181_v5 = vld [vmem:[%s333_s3] ss:$0 sm:$0xff] }
  0x17   :  { %137 = vmatpush.msra.mxu0 %v129_v14  ;;  %v122_v44 = vmul.f32 %v106_v36, %v70_v38  ;;  %v104_v45 = vcvt.s32.f32 %v88_v37  ;;  %v103_v49 = vcvt.s32.f32 %v87_v42  ;;  %v84_v54 = vunpack.c.1.s8 %v79_v39 }
  0x18   :  { %v121_v48 = vmul.f32 %v105_v41, %v69_v43  ;;  %v102_v53 = vcvt.s32.f32 %v86_v46  ;;  %v101_v57 = vcvt.s32.f32 %v85_v50  ;;  %v83_v58 = vunpack.c.0.s8 %v79_v39 }
  0x19   :  { %138 = vmatpush.msra.mxu0 %v128_v18  ;;  %v120_v52 = vmul.f32 %v104_v45, %v68_v47  ;;  %v119_v56 = vmul.f32 %v103_v49, %v67_v51  ;;  %v100_v61 = vcvt.s32.f32 %v84_v54 }
  0x1a   :  { %v118_v60 = vmul.f32 %v102_v53, %v66_v55  ;;  %v117_v63 = vmul.f32 %v101_v57, %v65_v59  ;;  %v99_v0 = vcvt.s32.f32 %v83_v58 }
  0x1b   :  { %139 = vmatpush.msra.mxu0 %v127_v23  ;;  %v116_v2 = vmul.f32 %v100_v61, %v64_v62 }
  0x1c   :  { %v115_v3 = vmul.f32 %v99_v0, %v63_v1 }
  0x1d   :  { %140 = vmatpush.msra.mxu0 %v126_v27 }
  0x1f   :  { %141 = vmatpush.msra.mxu0 %v125_v31 }
  0x21   :  { %142 = vmatpush.msra.mxu0 %v124_v35 }
  0x23   :  { %143 = vmatpush.msra.mxu0 %v123_v40 }
  0x25   :  { %144 = vmatpush.msra.mxu0 %v122_v44 }
  0x27   :  { %145 = vmatpush.msra.mxu0 %v121_v48 }
  0x29   :  { %146 = vmatpush.msra.mxu0 %v120_v52 }
  0x2b   :  { %147 = vmatpush.msra.mxu0 %v119_v56 }
  0x2d   :  { %148 = vmatpush.msra.mxu0 %v118_v60 }
  0x2f   :  { %149 = vmatpush.msra.mxu0 %v117_v63 }
  0x31   :  { %150 = vmatpush.msra.mxu0 %v116_v2 }
  0x33   :  { %151 = vmatpush.msra.mxu0 %v115_v3 }
  0x34   :  { %152 = vmatmul.f32.vlgmr.msra.gmra.mxu0 %v131_v4 }
  0xb1   :  { %v153_v6 = vpop.f32.mrf.mxu0 }
  0xb2   :  { %v154_v7 = vadd.f32 %v181_v5, %v153_v6 }
  0xb4   :  { %156 = vst [vmem:[#allocation8] sm:$0xff] %v154_v7 }
  0xb5   :  { %167 = dma.vmem_to_hbm [thread:$0]  %s163_s6, 128, %s165_s9, [#allocation4]  }
  0xb6   :  { %282 = dma.done.wait [#allocation4], 128  }
  0xb7   :  { %283 = vsyncadd [#allocation4], 4294967168 }
  0xb8   :  { %172 = vsyncpa [#allocation3], 1 }
  0xb9   :  { %173 = vsyncpa [#allocation6], 1 }
  0xba   :  { %174 = vsyncpa [#allocation4], 1 }

</bundles_post_ra>
